<compile_context>
chip_gen: v5e
topology: v5e:2x2
jax: 0.10.0
libtpu: 0.0.40
codegen_flags: <defaults>
</compile_context>

<pallas_src>
import functools
import numpy as np
import jax
import jax.numpy as jnp
from jax.experimental import pallas as pl
from jax.experimental.pallas import tpu as pltpu

SIZES = (1, 2, 3, 6)
BN_EPS = 1e-5
_LANE = 128


# ----------------------------- glue helpers (plain JAX / numpy) -----------------------------

def _round_up(x, m):
    return ((x + m - 1) // m) * m


def _bilinear_matrix_1d(out_size, in_size):
    """1-D weights matching F.interpolate(mode='bilinear', align_corners=False)."""
    scale = in_size / out_size
    m = np.zeros((out_size, in_size), dtype=np.float32)
    for d in range(out_size):
        src = scale * (d + 0.5) - 0.5
        src = max(src, 0.0)
        i0 = min(int(np.floor(src)), in_size - 1)
        i1 = min(i0 + 1, in_size - 1)
        w1 = src - i0
        m[d, i0] += 1.0 - w1
        m[d, i1] += w1
    return m


def _bilinear_matrix_2d(h, w, s):
    # (H*W, s*s) separable 2-D bilinear interpolation matrix
    return np.kron(_bilinear_matrix_1d(h, s), _bilinear_matrix_1d(w, s))


@functools.lru_cache(maxsize=None)
def _upsample_matrix(h, w, sizes, hw_pad, s2_pad):
    """Cached zero-padded (hw_pad, s2_pad) upsample matrix for all pyramid stages."""
    m = np.concatenate([_bilinear_matrix_2d(h, w, s) for s in sizes], axis=1)
    out = np.zeros((hw_pad, s2_pad), np.float32)
    out[: h * w, : m.shape[1]] = m
    return out


def _adaptive_avg_pool_nhwc(x, s):
    """AdaptiveAvgPool2d((s, s)) on NHWC, PyTorch bin boundaries."""
    n, h, w, c = x.shape
    rows = []
    for i in range(s):
        r0, r1 = (i * h) // s, -(-((i + 1) * h) // s)
        cols = []
        for j in range(s):
            c0, c1 = (j * w) // s, -(-((j + 1) * w) // s)
            cols.append(jnp.mean(x[:, r0:r1, c0:c1, :], axis=(1, 2)))
        rows.append(jnp.stack(cols, axis=1))
    return jnp.stack(rows, axis=1)  # (n, s, s, c)


# ----------------------------------- Pallas kernel -----------------------------------------

def _psp_bottleneck_kernel(x_ref, m_ref, v_ref, wf_ref, shift_ref, o_ref):
    # x_ref:(T,Fp)  m_ref:(T,S2p)  v_ref:(S2p,OUTp)  wf_ref:(Fp,OUTp)  shift_ref:(1,OUTp)
    z = jnp.dot(x_ref[...], wf_ref[...], preferred_element_type=jnp.float32)
    z = z + jnp.dot(m_ref[...], v_ref[...], preferred_element_type=jnp.float32)
    z = z + shift_ref[...]                       # BN shift (scale pre-folded into weights)
    o_ref[...] = jnp.maximum(z, 0.0).astype(o_ref.dtype)


def psp_bottleneck_pallas(x_flat, m_mat, v, wf_t, shift, *, tile, out_dtype):
    n, hw_p, fp = x_flat.shape
    s2p = m_mat.shape[1]
    out_p = wf_t.shape[1]
    assert hw_p % tile == 0, "wrapper must pad H*W to a multiple of the tile"
    grid = (n, hw_p // tile)
    # NOTE: wf/shift (and v within a batch) have constant index_maps, so they are only
    # re-DMA'd when their block index changes; at very large F/OUT one could additionally
    # single-buffer them via pipeline_mode to save VMEM on v7x.
    return pl.pallas_call(
        _psp_bottleneck_kernel,
        out_shape=jax.ShapeDtypeStruct((n, hw_p, out_p), out_dtype),
        grid_spec=pltpu.PrefetchScalarGridSpec(
            num_scalar_prefetch=0,
            grid=grid,
            in_specs=[
                pl.BlockSpec((None, tile, fp), lambda i, t: (i, t, 0)),     # feats tile
                pl.BlockSpec((tile, s2p), lambda i, t: (t, 0)),             # upsample matrix
                pl.BlockSpec((None, s2p, out_p), lambda i, t: (i, 0, 0)),   # folded stage vals
                pl.BlockSpec((fp, out_p), lambda i, t: (0, 0)),             # bottleneck W (feats)
                pl.BlockSpec((1, out_p), lambda i, t: (0, 0)),              # BN shift
            ],
            out_specs=pl.BlockSpec((None, tile, out_p), lambda i, t: (i, t, 0)),
        ),
        compiler_params=pltpu.CompilerParams(
            dimension_semantics=("parallel", "parallel"),
            vmem_limit_bytes=48 * 1024 * 1024,   # under v7x's 64 MiB physical, ample headroom
        ),
    )(x_flat, m_mat, v, wf_t, shift)


def _pick_tile(tile_hint, hw, n):
    """Spatial tile: as large as requested, 128-aligned, never larger than padded H*W.
    If batch==1, keep >=2 tiles along H*W so the grid can still shard across v7x's 2 TCs."""
    t = min(tile_hint, _round_up(hw, _LANE))
    t = max(_LANE, (t // _LANE) * _LANE)
    if n == 1:
        while t > _LANE and (hw + t - 1) // t < 2:
            t //= 2
        t = max(_LANE, (t // _LANE) * _LANE)
    return t


# ----------------------------------- module forward ----------------------------------------

def init_psp_params(key, features, out_features):
    keys = jax.random.split(key, 5 * (len(SIZES) + 1))
    ki = iter(keys)

    def bn_params(of):
        return dict(
            gamma=1.0 + 0.1 * jax.random.normal(next(ki), (of,), jnp.float32),
            beta=0.1 * jax.random.normal(next(ki), (of,), jnp.float32),
            mean=0.1 * jax.random.normal(next(ki), (of,), jnp.float32),
            var=0.5 + jax.random.uniform(next(ki), (of,), jnp.float32),
        )

    stages = []
    for _ in SIZES:
        w = jax.random.normal(next(ki), (out_features, features), jnp.float32) / np.sqrt(features)
        stages.append(dict(w=w, **bn_params(out_features)))
    c_in = features + len(SIZES) * out_features
    wb = jax.random.normal(next(ki), (out_features, c_in), jnp.float32) / np.sqrt(c_in)
    bottleneck = dict(w=wb, **bn_params(out_features))
    return dict(stages=stages, bottleneck=bottleneck)


def psp_forward(params, x_nchw, *, tile=512, compute_dtype=jnp.bfloat16, out_dtype=None):
    # NOTE: BN in inference mode (running stats); Dropout2d(0.1) is identity in eval.
    # TODO(synk): train-mode BN batch statistics and Dropout2d RNG masking not implemented.
    n, f, h, w = x_nchw.shape
    hw = h * w
    x = jnp.transpose(x_nchw, (0, 2, 3, 1))                      # NCHW -> NHWC
    bnb = params['bottleneck']
    wb = bnb['w']                                                # (OUT, 4*OUT + F)
    out_f = wb.shape[0]
    out_dtype = x_nchw.dtype if out_dtype is None else out_dtype

    # Fold bottleneck BN: scale into conv weights, keep only the shift as a bias.
    inv_std_b = 1.0 / jnp.sqrt(bnb['var'] + BN_EPS)
    scale = bnb['gamma'] * inv_std_b                             # (OUT,)
    shift = bnb['beta'] - bnb['mean'] * scale                    # (OUT,)

    # Tiny per-stage path (<=36 rows): adaptive pool -> 1x1 conv -> BN, then fold the
    # bottleneck's per-stage weight slice (scale included) so the kernel only needs M @ V.
    v_blocks = []
    for k, s in enumerate(SIZES):
        st = params['stages'][k]
        pooled = _adaptive_avg_pool_nhwc(x, s).reshape(n, s * s, f)
        conv = jnp.einsum('nkf,of->nko', pooled, st['w'])        # stage 1x1 conv (tiny)
        inv_std = 1.0 / jnp.sqrt(st['var'] + BN_EPS)
        prior = (conv - st['mean']) * inv_std * st['gamma'] + st['beta']
        wb_s = wb[:, k * out_f:(k + 1) * out_f] * scale[:, None]
        v_blocks.append(jnp.einsum('nko,po->nkp', prior, wb_s))  # (n, s*s, OUT)
    v = jnp.concatenate(v_blocks, axis=1)                        # (N, S2, OUT)
    s2 = v.shape[1]

    wf_t = (wb[:, len(SIZES) * out_f:] * scale[:, None]).T       # (F, OUT), BN scale folded

    # Lane-dense / MXU-friendly padding (zero pads are exact no-ops, sliced off afterwards).
    tile_eff = _pick_tile(tile, hw, n)
    hw_p = _round_up(hw, tile_eff)
    fp = _round_up(f, _LANE)
    out_p = _round_up(out_f, _LANE)
    s2p = _round_up(s2, _LANE)

    x_flat = x.reshape(n, hw, f)
    x_flat = jnp.pad(x_flat, ((0, 0), (0, hw_p - hw), (0, fp - f))).astype(compute_dtype)
    m_mat = jnp.asarray(_upsample_matrix(h, w, SIZES, hw_p, s2p), dtype=compute_dtype)
    v = jnp.pad(v, ((0, 0), (0, s2p - s2), (0, out_p - out_f))).astype(compute_dtype)
    wf_t = jnp.pad(wf_t, ((0, fp - f), (0, out_p - out_f))).astype(compute_dtype)
    shift_p = jnp.pad(shift, (0, out_p - out_f))[None, :].astype(jnp.float32)

    out_flat = psp_bottleneck_pallas(x_flat, m_mat, v, wf_t, shift_p,
                                     tile=tile_eff, out_dtype=out_dtype)
    out = out_flat[:, :hw, :out_f].reshape(n, h, w, out_f)
    return jnp.transpose(out, (0, 3, 1, 2))                      # back to NCHW


def psp_forward_ref(params, x_nchw):
    """Pure-JAX literal reference (upsample -> concat -> bottleneck conv -> BN -> ReLU)."""
    n, f, h, w = x_nchw.shape
    x = jnp.transpose(x_nchw, (0, 2, 3, 1))
    bnb = params['bottleneck']
    wb = bnb['w']
    out_f = wb.shape[0]
    priors = []
    for k, s in enumerate(SIZES):
        st = params['stages'][k]
        pooled = _adaptive_avg_pool_nhwc(x, s).reshape(n, s * s, f)
        conv = jnp.einsum('nkf,of->nko', pooled, st['w'])
        inv_std = 1.0 / jnp.sqrt(st['var'] + BN_EPS)
        prior = (conv - st['mean']) * inv_std * st['gamma'] + st['beta']
        m_s = jnp.asarray(_bilinear_matrix_2d(h, w, s))
        priors.append(jnp.einsum('pk,nko->npo', m_s, prior))
    cat = jnp.concatenate(priors + [x.reshape(n, h * w, f)], axis=-1)
    z = jnp.einsum('npc,oc->npo', cat, wb)
    z = (z - bnb['mean']) / jnp.sqrt(bnb['var'] + BN_EPS) * bnb['gamma'] + bnb['beta']
    z = jnp.maximum(z, 0.0)
    return jnp.transpose(z.reshape(n, h, w, out_f), (0, 3, 1, 2))


if __name__ == "__main__":
    N, F_IN, H, W = 2, 32, 16, 16       # small demo shapes (PyTorch NCHW input)
    OUT_F = 64                          # out_features (512 in the original module)

    x = jax.random.normal(jax.random.PRNGKey(0), (N, F_IN, H, W), jnp.float32)
    params = init_psp_params(jax.random.PRNGKey(42), F_IN, OUT_F)

    ref = psp_forward_ref(params, x)

    # f32 compute path: tight check of the fused-kernel math (padding, BN folding, grid).
    out_f32 = jax.block_until_ready(psp_forward(params, x, compute_dtype=jnp.float32))
    assert out_f32.shape == (N, OUT_F, H, W)
    assert bool(jnp.allclose(out_f32, ref, rtol=1e-3, atol=1e-3)), "f32 mismatch vs reference"

    # Default fast path: bf16 matmul inputs, f32 accumulation -> looser tolerance.
    out_bf16 = jax.block_until_ready(psp_forward(params, x))
    assert out_bf16.shape == (N, OUT_F, H, W)
    assert bool(jnp.allclose(out_bf16, ref, rtol=4e-2, atol=4e-2)), "bf16 mismatch vs reference"

    print("KERNEL_OK")
</pallas_src>

<mosaic_0001>
module attributes {stable_mosaic.version = 11 : i64} {
  func.func @_psp_bottleneck_kernel(%arg0: i32, %arg1: i32, %arg2: memref<1x256x128xf32, #tpu.memory_space<vmem>>, %arg3: memref<256x128xf32, #tpu.memory_space<vmem>>, %arg4: memref<1x128x128xf32, #tpu.memory_space<vmem>>, %arg5: memref<128x128xf32, #tpu.memory_space<vmem>>, %arg6: memref<1x128xf32, #tpu.memory_space<vmem>>, %arg7: memref<1x256x128xf32, #tpu.memory_space<vmem>>) attributes {dimension_semantics = [#tpu.dimension_semantics<parallel>, #tpu.dimension_semantics<parallel>], iteration_bounds = array<i64: 2, 1>, scalar_prefetch = 0 : i64, scratch_operands = 0 : i64, tpu.core_type = #tpu.core_type<tc>, window_params = [{transform_indices = @transform_0, window_bounds = array<i64: 1, 256, 128>}, {transform_indices = @transform_1, window_bounds = array<i64: 256, 128>}, {transform_indices = @transform_2, window_bounds = array<i64: 1, 128, 128>}, {pipeline_mode = #tpu.pipeline_mode<synchronous>, transform_indices = @transform_3, window_bounds = array<i64: 128, 128>}, {pipeline_mode = #tpu.pipeline_mode<synchronous>, transform_indices = @transform_4, window_bounds = array<i64: 1, 128>}, {transform_indices = @transform_5, window_bounds = array<i64: 1, 256, 128>}]} {
    %c0 = arith.constant 0 : index
    %c0_0 = arith.constant 0 : index
    %c0_1 = arith.constant 0 : index
    %0 = vector.load %arg2[%c0, %c0_0, %c0_1] : memref<1x256x128xf32, #tpu.memory_space<vmem>>, vector<1x256x128xf32>
    %1 = vector.shape_cast %0 : vector<1x256x128xf32> to vector<256x128xf32>
    %c0_2 = arith.constant 0 : index
    %c0_3 = arith.constant 0 : index
    %2 = vector.load %arg5[%c0_2, %c0_3] : memref<128x128xf32, #tpu.memory_space<vmem>>, vector<128x128xf32>
    %cst = arith.constant dense<0.000000e+00> : vector<256x128xf32>
    %3 = tpu.matmul %1, %2, %cst {dimension_numbers = #tpu.dot_dimension_numbers<[1], [0], [0], [1], [0, 0, 1, 1], [], []>} : vector<256x128xf32>, vector<128x128xf32>, vector<256x128xf32> -> vector<256x128xf32>
    %c0_4 = arith.constant 0 : index
    %c0_5 = arith.constant 0 : index
    %4 = vector.load %arg3[%c0_4, %c0_5] : memref<256x128xf32, #tpu.memory_space<vmem>>, vector<256x128xf32>
    %c0_6 = arith.constant 0 : index
    %c0_7 = arith.constant 0 : index
    %c0_8 = arith.constant 0 : index
    %5 = vector.load %arg4[%c0_6, %c0_7, %c0_8] : memref<1x128x128xf32, #tpu.memory_space<vmem>>, vector<1x128x128xf32>
    %6 = vector.shape_cast %5 : vector<1x128x128xf32> to vector<128x128xf32>
    %cst_9 = arith.constant dense<0.000000e+00> : vector<256x128xf32>
    %7 = tpu.matmul %4, %6, %cst_9 {dimension_numbers = #tpu.dot_dimension_numbers<[1], [0], [0], [1], [0, 0, 1, 1], [], []>} : vector<256x128xf32>, vector<128x128xf32>, vector<256x128xf32> -> vector<256x128xf32>
    %8 = arith.addf %3, %7 : vector<256x128xf32>
    %c0_10 = arith.constant 0 : index
    %c0_11 = arith.constant 0 : index
    %9 = vector.load %arg6[%c0_10, %c0_11] : memref<1x128xf32, #tpu.memory_space<vmem>>, vector<1x128xf32>
    %10 = vector.broadcast %9 : vector<1x128xf32> to vector<256x128xf32>
    %11 = arith.addf %8, %10 : vector<256x128xf32>
    %cst_12 = arith.constant 0.000000e+00 : f32
    %12 = vector.broadcast %cst_12 : f32 to vector<256x128xf32>
    %13 = arith.maximumf %11, %12 : vector<256x128xf32>
    %c0_13 = arith.constant 0 : index
    %c0_14 = arith.constant 0 : index
    %c0_15 = arith.constant 0 : index
    %14 = vector.load %arg7[%c0_13, %c0_14, %c0_15] : memref<1x256x128xf32, #tpu.memory_space<vmem>>, vector<1x256x128xf32>
    %15 = vector.shape_cast %14 : vector<1x256x128xf32> to vector<256x128xf32>
    %16 = vector.shape_cast %13 : vector<256x128xf32> to vector<1x256x128xf32>
    tpu.vector_store %arg7[%c0_13, %c0_14, %c0_15], %16 {strides = array<i32>} : memref<1x256x128xf32, #tpu.memory_space<vmem>>, vector<1x256x128xf32>,
    return
  }
  func.func @transform_0(%arg0: i32, %arg1: i32) -> (i32, i32, i32) {
    %c0_i32 = arith.constant 0 : i32
    %c0_i32_0 = arith.constant 0 : i32
    return %arg0, %arg1, %c0_i32 : i32, i32, i32
  }
  func.func @transform_1(%arg0: i32, %arg1: i32) -> (i32, i32) {
    %c0_i32 = arith.constant 0 : i32
    %c0_i32_0 = arith.constant 0 : i32
    return %arg1, %c0_i32 : i32, i32
  }
  func.func @transform_2(%arg0: i32, %arg1: i32) -> (i32, i32, i32) {
    %c0_i32 = arith.constant 0 : i32
    %c0_i32_0 = arith.constant 0 : i32
    %c0_i32_1 = arith.constant 0 : i32
    return %arg0, %c0_i32, %c0_i32_0 : i32, i32, i32
  }
  func.func @transform_3(%arg0: i32, %arg1: i32) -> (i32, i32) {
    %c0_i32 = arith.constant 0 : i32
    %c0_i32_0 = arith.constant 0 : i32
    %c0_i32_1 = arith.constant 0 : i32
    return %c0_i32, %c0_i32_0 : i32, i32
  }
  func.func @transform_4(%arg0: i32, %arg1: i32) -> (i32, i32) {
    %c0_i32 = arith.constant 0 : i32
    %c0_i32_0 = arith.constant 0 : i32
    %c0_i32_1 = arith.constant 0 : i32
    return %c0_i32, %c0_i32_0 : i32, i32
  }
  func.func @transform_5(%arg0: i32, %arg1: i32) -> (i32, i32, i32) {
    %c0_i32 = arith.constant 0 : i32
    %c0_i32_0 = arith.constant 0 : i32
    return %arg0, %arg1, %c0_i32 : i32, i32, i32
  }
}

</mosaic_0001>

<bundles_post_ra>
// kernel: tpu_custom_call.1
= control target key start
LH: loop header
LB: loop body
LE: loop exit
PB: predicated region body
PF: predicated region fallthrough
CT: control target
= control target key end

     0   :  { %s1637_s0 = inlined_call_operand.hbm [shape: f32[2,256,128], index: 0, kind: input, shape index: {}]   ;;  %s1638_s1 = inlined_call_operand.hbm [shape: f32[256,128], index: 1, kind: input, shape index: {}]   ;;  %s1639_s2 = inlined_call_operand.hbm [shape: f32[2,128,128], index: 2, kind: input, shape index: {}]   ;;  %s1640_s3 = inlined_call_operand.hbm [shape: f32[128,128], index: 3, kind: input, shape index: {}]   ;;  %s1641_s4 = inlined_call_operand.vmem [shape: f32[1,128], index: 4, kind: input, shape index: {}]   ;;  %s1642_s5 = inlined_call_operand.hbm [shape: f32[2,256,128], index: 5, kind: output, shape index: {}]  }
   0x1   :  { %1653 = sst [smem:[#allocation21_spill]] %s1637_s0 }
   0x2   :  { %1654 = sst [smem:[#allocation22_spill]] %s1638_s1 }
   0x3   :  { %10 = vsyncpa [#allocation3], 0 }
   0x4   :  { %12 = vsyncpa [#allocation3 + $0x1], 0 }
   0x5   :  { %13 = vsyncpa [#allocation6], 0 }
   0x6   :  { %14 = vsyncpa [#allocation4], 0 }
   0x7   :  { %16 = vsyncpa [#allocation4 + $0x1], 0  ;;  %s1317_s18 = smov 0   ;;  %s1319_s19 = smov 0  }
   0x8   :  { %s1321_s20 = smov 0   ;;  %s1323_s21 = smov 0  }
   0x9   :  { %s1325_s22 = smov 0   ;;  %s1327_s23 = smov 0  }
   0xa LB: > { %1655 = sst [smem:[#allocation15_spill]] %s1259_s18  ;;  %s1348_s24 = sadd.s32 4294967295, %s1279_s23   ;;  %s1279_s23 = sphi %s1327_s23, %s22_s23   ;;  %s1275_s22 = sphi %s1325_s22, %s1681_s22   ;;  %s1271_s21 = sphi %s1323_s21, %s1680_s21   ;;  %s1267_s20 = sphi %s1321_s20, %s1676_s20   ;;  %s1263_s19 = sphi %s1319_s19, %s1679_s19   ;;  %s1259_s18 = sphi %s1317_s18, %s1678_s18  }
   0xb   : > { %1656 = sst [smem:[#allocation16_spill]] %s1267_s20  ;;  %s915_s25 = sadd.s32 4294967294, %s1279_s23  }
   0xc   : > { %1657 = sst [smem:[#allocation17_spill]] %s1279_s23  ;;  %p56_p0 = scmp.ne.s32.totalorder %s1263_s19, %s1259_s18 }
   0xd   : > { %p57_p1 = scmp.eq.s32.totalorder %s1348_s24, 0  ;;  %p176_p2 = scmp.eq.s32.totalorder %s1348_s24, 1 }
   0xe   : > { %p182_p3 = scmp.eq.s32.totalorder %s915_s25, 1  ;;  %p916_p5 = scmp.ge.s32.totalorder %s1279_s23, 1 }
   0xf   : > { %p1357_p4 = por %p57_p1, %p56_p0  ;;  %p189_p7 = scmp.lt.s32.totalorder %s1279_s23, 3 }
  0x10   : > { %p1362_p6 = por %p182_p3, %p56_p0  ;;  %s1661_s1 = sld [smem:[#allocation22_spill]] }
  0x11   : > { %p1370_p8 = pnand %p916_p5, %p189_p7  ;;  %s1281_s7 = smov [#allocation5]  }
  0x12   : > { %s1659_s27 = scalar_select %p1362_p6, 1, 0 }
  0x13   : > { %p986_p9 = pneg %p1370_p8  ;;  %s205_s8 = sshll.u32 %s1281_s7, 4  ;;  %s206_s8 = int_to_ptr.vmem [resolvable:$true] %s205_s8 }
  0x14   : > { %1660 = sst [smem:[#allocation18_spill]] %s1659_s27  ;;  %p919_p11 = scmp.ge.s32.totalorder %s1279_s23, 2 }
  0x15   : > { %p1378_p10 = pnand %p986_p9, %p57_p1  ;;  %s1643_s10 = smov 128  }
  0x16   : > { %s203_s30 = sshll.u32 %s1661_s1, 4  ;;  %s1645_s11 = smov 8   ;;  %s204_s30 = int_to_ptr.hbm [resolvable:$true] %s203_s30 }
  0x17   : > { %989 = dma.hbm_to_vmem [thread:$0]  (!%p1378_p10), %s204_s30, 4096, %s206_s8, [#allocation6], %s1643_s10, %s1643_s10, %s1645_s11  }
  0x18   : > { %s34_s12 = sadd.s32 1, %s1275_s22  ;;  %s43_s13 = sadd.s32 1, %s1267_s20 }
  0x19   : > { %p36_p12 = scmp.ge.s32.totalorder %s34_s12, 2  ;;  %p50_p13 = scmp.ne.s32.totalorder %s1267_s20, %s1263_s19 }
  0x1a   : > { %p51_p0 = scmp.eq.s32.totalorder %s1279_s23, 0  ;;  %p1006_p7 = scmp.lt.s32.totalorder %s1279_s23, 2 }
  0x1b   : > { %s1683_s12 = smov (%p36_p12, %s34_s12), 0  ;;  %p1401_p5 = por %p176_p2, %p50_p13 }
  0x1c   : > { %1664 = sst [smem:[#allocation19_spill]] %s1683_s12  ;;  %p1395_p3 = por %p51_p0, %p50_p13 }
  0x1d   : > { %s38_s16 = ssub.s32 %s1275_s22, %s1683_s12  ;;  %s236_s17 = sand.u32 1, %s1279_s23  }
  0x1e   : > { %p41_p9 = scmp.eq.s32.totalorder %s38_s16, 0  ;;  %s238_s25 = sand.u32 1, %s1267_s20  }
  0x1f   : > { %s920_s29 = sshll.u32 %s238_s25, 8  ;;  %s937_s30 = sshll.u32 %s1275_s22, 8 }
  0x20   : > { %s1411_s28 = scalar_select %p41_p9, %s1267_s20, %s43_s13  }
  0x21   : > { %s1668_s0 = sld [smem:[#allocation21_spill]]  ;;  %s240_s1 = scalar_lea.vmem [#allocation2], %s920_s29 }
  0x22   : > { %1667 = sst [smem:[#allocation20_spill]] %s1411_s28  ;;  %s250_s27 = sshll.u32 %s240_s1, 4  ;;  %s251_s27 = int_to_ptr.vmem [resolvable:$true] %s250_s27 }
  0x23   : > { %p1421_p2 = pnand %p1006_p7, %p1395_p3  ;;  %s923_s13 = sshll.u32 %s238_s25, 7 }
  0x24   : > { %s264_s7 = scalar_lea.vmem [#allocation7], %s923_s13  ;;  %s237_s29 = scalar_lea.sflag [#allocation3], %s236_s17 }
  0x25   : > { %s1670_s1 = smov 8   ;;  %s1671_s8 = smov 128  }
  0x26   : > { %s1284_s14 = smov [#allocation8]   ;;  %s938_s20 = sshll.u32 %s1275_s22, 7 }
  0x27   : > { %s247_s10 = scalar_lea.hbm %s1668_s0, %s937_s30  ;;  %s217_s30 = sshll.u32 %s1640_s3, 4  ;;  %s218_s30 = int_to_ptr.hbm [resolvable:$true] %s217_s30 }
  0x28   : > { %s248_s11 = sshll.u32 %s247_s10, 4  ;;  %s272_s10 = sshll.u32 %s264_s7, 4  ;;  %s249_s11 = int_to_ptr.hbm [resolvable:$true] %s248_s11  ;;  %s273_s10 = int_to_ptr.vmem [resolvable:$true] %s272_s10 }
  0x29   : > { %996 = dma.hbm_to_vmem [thread:$0]  (!%p1421_p2), %s249_s11, 4096, %s251_s27, %s237_s29, %s1671_s8, %s1671_s8, %s1670_s1  }
  0x2a   : > { %s219_s0 = sshll.u32 %s1284_s14, 4  ;;  %s269_s18 = scalar_lea.hbm %s1639_s2, %s938_s20  ;;  %s220_s0 = int_to_ptr.vmem [resolvable:$true] %s219_s0 }
  0x2b   : > { %992 = dma.hbm_to_vmem [thread:$0]  (!%p1378_p10), %s218_s30, 2048, %s220_s0, [#allocation6], %s1671_s8, %s1671_s8, %s1670_s1  }
  0x2c   : > { %s270_s12 = sshll.u32 %s269_s18, 4  ;;  %284 = sbr.rel (%p1370_p8) target bundleno = 352 (0x160), region = 40  ;;  %s271_s12 = int_to_ptr.hbm [resolvable:$true] %s270_s12 }
  0x2d   : > { %999 = dma.hbm_to_vmem [thread:$0]  (!%p1421_p2), %s271_s12, 2048, %s273_s10, %s237_s29, %s1671_s8, %s1671_s8, %s1670_s1  }
  0x2e   : > { %s286_s20 = sand.u32 (!%p1370_p8), 1, %s1348_s24   ;;  %s1451_s23 = sand.u32 (!%p1370_p8), 1, %s1263_s19  }
  0x2f   : > { %s927_s0 = sshll.u32 (!%p1370_p8), %s1451_s23, 8  ;;  %s287_s18 = scalar_lea.sflag (!%p1370_p8), [#allocation3], %s286_s20 }
  0x30   : > { %s1456_s27 = scalar_lea.vmem (!%p1370_p8), [#allocation2], %s927_s0 }
  0x31   : > { %1238 = dma.done.wait (%p1357_p4), %s287_s18, 4096  }
  0x32   : > { %1240 = vsyncadd (%p1357_p4), %s287_s18, 4294963200 }
  0x33   : > { %1242 = dma.done.wait (%p57_p1), [#allocation6], 4096  }
  0x34   : > { %1244 = vsyncadd (%p57_p1), [#allocation6], 4294963200  ;;  %s929_s6 = sshll.u32 %s1451_s23, 7 }
  0x35   : > { %s1467_s9 = scalar_lea.vmem [#allocation7], %s929_s6 }
  0x36   : > { %1246 = dma.done.wait (%p1357_p4), %s287_s18, 2048  }
  0x37   : > { %1248 = vsyncadd (%p1357_p4), %s287_s18, 4294965248 }
  0x38   : > { %1250 = dma.done.wait (%p57_p1), [#allocation6], 2048  }
  0x39   : > { %1252 = vsyncadd (%p57_p1), [#allocation6], 4294965248  ;;  %v441_v0 = vld [vmem:[%s1467_s9 + $0x78] sm:$0xff]  ;;  %v440_v2 = vld [vmem:[%s1467_s9 + $0x70] sm:$0xff]  ;;  %s1533_s11 = scalar_lea.vmem [#allocation9], %s927_s0  ;;  %s939_s17 = sshll.u32 %s1271_s21, 8 }
  0x3a   : > { %v393_v1 = vld [vmem:[#allocation8 + $0x78] sm:$0xff]  ;;  %940 = vmatpush.msra.mxu2 %v441_v0  ;;  %v392_v3 = vld [vmem:[#allocation8 + $0x70] sm:$0xff]  ;;  %v439_v4 = vld [vmem:[%s1467_s9 + $0x68] sm:$0xff]  ;;  %442 = vmatpush.msra.mxu0 %v441_v0  ;;  %s782_s13 = scalar_lea.hbm %s1642_s5, %s939_s17  ;;  %s783_s30 = sshll.u32 %s1533_s11, 4  ;;  %s784_s30 = int_to_ptr.vmem [resolvable:$true] %s783_s30 }
  0x3b   : > { %956 = vmatpush.msra.mxu3 %v393_v1  ;;  %v391_v5 = vld [vmem:[#allocation8 + $0x68] sm:$0xff]  ;;  %555 = vmatpush.msra.mxu1 %v393_v1  ;;  %v438_v6 = vld [vmem:[%s1467_s9 + $0x60] sm:$0xff]  ;;  %v437_v8 = vld [vmem:[%s1467_s9 + $0x58] sm:$0xff]  ;;  %s785_s21 = sshll.u32 %s782_s13, 4  ;;  %s769_s7 = scalar_lea.sflag [#allocation4], %s1451_s23  ;;  %s786_s21 = int_to_ptr.hbm [resolvable:$true] %s785_s21 }
  0x3c   : > { %941 = vmatpush.msra.mxu2 %v440_v2  ;;  %v390_v7 = vld [vmem:[#allocation8 + $0x60] sm:$0xff]  ;;  %443 = vmatpush.msra.mxu0 %v440_v2  ;;  %v389_v9 = vld [vmem:[#allocation8 + $0x58] sm:$0xff]  ;;  %v436_v10 = vld [vmem:[%s1467_s9 + $0x50] sm:$0xff]  ;;  %s1199_s10 = sshra.s32 %s786_s21, 4  ;;  %s1205_s14 = scalar_lea.hbm %s1642_s5, 512  ;;  %s1200_s10 = int_to_ptr.hbm [resolvable:$true] %s1199_s10 }
  0x3d   : > { %957 = vmatpush.msra.mxu3 %v392_v3  ;;  %556 = vmatpush.msra.mxu1 %v392_v3  ;;  %v388_v11 = vld [vmem:[#allocation8 + $0x50] sm:$0xff]  ;;  %v435_v12 = vld [vmem:[%s1467_s9 + $0x48] sm:$0xff]  ;;  %v434_v14 = vld [vmem:[%s1467_s9 + $0x40] sm:$0xff]  ;;  %s1201_s29 = scalar_lea.hbm %s1200_s10, 256  ;;  %p1206_p10 = scmp.lt.s32.totalorder %s1200_s10, %s1642_s5 }
  0x3e   : > { %942 = vmatpush.msra.mxu2 %v439_v4  ;;  %444 = vmatpush.msra.mxu0 %v439_v4  ;;  %v387_v13 = vld [vmem:[#allocation8 + $0x48] sm:$0xff]  ;;  %v386_v15 = vld [vmem:[#allocation8 + $0x40] sm:$0xff]  ;;  %v433_v16 = vld [vmem:[%s1467_s9 + $0x38] sm:$0xff]  ;;  %p1202_p1 = scmp.ne.s32.totalorder %s1200_s10, %s1201_s29  ;;  %p1207_p12 = scmp.lt.s32.totalorder %s1205_s14, %s1201_s29 }
  0x3f   : > { %958 = vmatpush.msra.mxu3 %v391_v5  ;;  %557 = vmatpush.msra.mxu1 %v391_v5  ;;  %v385_v17 = vld [vmem:[#allocation8 + $0x38] sm:$0xff]  ;;  %v432_v18 = vld [vmem:[%s1467_s9 + $0x30] sm:$0xff]  ;;  %v431_v20 = vld [vmem:[%s1467_s9 + $0x28] sm:$0xff] }
  0x40   : > { %943 = vmatpush.msra.mxu2 %v438_v6  ;;  %445 = vmatpush.msra.mxu0 %v438_v6  ;;  %v384_v19 = vld [vmem:[#allocation8 + $0x30] sm:$0xff]  ;;  %v383_v21 = vld [vmem:[#allocation8 + $0x28] sm:$0xff]  ;;  %v430_v22 = vld [vmem:[%s1467_s9 + $0x20] sm:$0xff]  ;;  %p1203_p4 = pnand %p1202_p1, %p1401_p5  ;;  %p1208_p13 = por %p1207_p12, %p1206_p10 }
  0x41   : > { %959 = vmatpush.msra.mxu3 %v390_v7  ;;  %558 = vmatpush.msra.mxu1 %v390_v7  ;;  %v382_v23 = vld [vmem:[#allocation8 + $0x20] sm:$0xff]  ;;  %v429_v24 = vld [vmem:[%s1467_s9 + $0x18] sm:$0xff]  ;;  %v428_v26 = vld [vmem:[%s1467_s9 + $0x10] sm:$0xff] }
  0x42   : > { %944 = vmatpush.msra.mxu2 %v437_v8  ;;  %446 = vmatpush.msra.mxu0 %v437_v8  ;;  %v381_v25 = vld [vmem:[#allocation8 + $0x18] sm:$0xff]  ;;  %v380_v27 = vld [vmem:[#allocation8 + $0x10] sm:$0xff]  ;;  %v427_v28 = vld [vmem:[%s1467_s9 + $0x8] sm:$0xff]  ;;  %p1204_p8 = pneg %p1203_p4 }
  0x43   : > { %960 = vmatpush.msra.mxu3 %v389_v9  ;;  %559 = vmatpush.msra.mxu1 %v389_v9  ;;  %v379_v29 = vld [vmem:[#allocation8 + $0x8] sm:$0xff]  ;;  %v426_v30 = vld [vmem:[%s1467_s9] sm:$0xff]  ;;  %v412_v40 = vld [vmem:[#allocation5 + $0x90] sm:$0xff] }
  0x44   : > { %945 = vmatpush.msra.mxu2 %v436_v10  ;;  %447 = vmatpush.msra.mxu0 %v436_v10  ;;  %v378_v31 = vld [vmem:[#allocation8] sm:$0xff]  ;;  %v411_v36 = vld [vmem:[#allocation5 + $0x88] sm:$0xff]  ;;  %v364_v41 = vld [vmem:[%s1456_s27 + $0x90] sm:$0xff]  ;;  %p1209_p0 = pnand %p1208_p13, %p1204_p8 }
  0x45   : > { %961 = vmatpush.msra.mxu3 %v388_v11  ;;  %560 = vmatpush.msra.mxu1 %v388_v11  ;;  %v410_v32 = vld [vmem:[#allocation5 + $0x80] sm:$0xff]  ;;  %v363_v37 = vld [vmem:[%s1456_s27 + $0x88] sm:$0xff]  ;;  %v396_v42 = vld [vmem:[#allocation5 + $0x10] sm:$0xff] }
  0x46   : > { %946 = vmatpush.msra.mxu2 %v435_v12  ;;  %448 = vmatpush.msra.mxu0 %v435_v12  ;;  %v362_v33 = vld [vmem:[%s1456_s27 + $0x80] sm:$0xff]  ;;  %v395_v38 = vld [vmem:[#allocation5 + $0x8] sm:$0xff]  ;;  %v348_v43 = vld [vmem:[%s1456_s27 + $0x10] sm:$0xff] }
  0x47   : > { %962 = vmatpush.msra.mxu3 %v387_v13  ;;  %561 = vmatpush.msra.mxu1 %v387_v13  ;;  %v394_v34 = vld [vmem:[#allocation5] sm:$0xff]  ;;  %v347_v39 = vld [vmem:[%s1456_s27 + $0x8] sm:$0xff]  ;;  %v413_v44 = vld [vmem:[#allocation5 + $0x98] sm:$0xff] }
  0x48   : > { %947 = vmatpush.msra.mxu2 %v434_v14  ;;  %449 = vmatpush.msra.mxu0 %v434_v14  ;;  %v346_v35 = vld [vmem:[%s1456_s27] sm:$0xff]  ;;  %v365_v45 = vld [vmem:[%s1456_s27 + $0x98] sm:$0xff]  ;;  %v415_v52 = vld [vmem:[#allocation5 + $0xa8] sm:$0xff] }
  0x49   : > { %963 = vmatpush.msra.mxu3 %v386_v15  ;;  %562 = vmatpush.msra.mxu1 %v386_v15  ;;  %v397_v46 = vld [vmem:[#allocation5 + $0x18] sm:$0xff]  ;;  %v414_v48 = vld [vmem:[#allocation5 + $0xa0] sm:$0xff]  ;;  %v367_v53 = vld [vmem:[%s1456_s27 + $0xa8] sm:$0xff] }
  0x4a   : > { %948 = vmatpush.msra.mxu2 %v433_v16  ;;  %450 = vmatpush.msra.mxu0 %v433_v16  ;;  %v349_v47 = vld [vmem:[%s1456_s27 + $0x18] sm:$0xff]  ;;  %v366_v49 = vld [vmem:[%s1456_s27 + $0xa0] sm:$0xff]  ;;  %v399_v54 = vld [vmem:[#allocation5 + $0x28] sm:$0xff] }
  0x4b   : > { %964 = vmatpush.msra.mxu3 %v385_v17  ;;  %563 = vmatpush.msra.mxu1 %v385_v17  ;;  %v398_v50 = vld [vmem:[#allocation5 + $0x20] sm:$0xff]  ;;  %v351_v55 = vld [vmem:[%s1456_s27 + $0x28] sm:$0xff]  ;;  %v416_v56 = vld [vmem:[#allocation5 + $0xb0] sm:$0xff] }
  0x4c   : > { %949 = vmatpush.msra.mxu2 %v432_v18  ;;  %451 = vmatpush.msra.mxu0 %v432_v18  ;;  %v350_v51 = vld [vmem:[%s1456_s27 + $0x20] sm:$0xff]  ;;  %v368_v57 = vld [vmem:[%s1456_s27 + $0xb0] sm:$0xff]  ;;  %v417_v60 = vld [vmem:[#allocation5 + $0xb8] sm:$0xff] }
  0x4d   : > { %965 = vmatpush.msra.mxu3 %v384_v19  ;;  %564 = vmatpush.msra.mxu1 %v384_v19  ;;  %v400_v58 = vld [vmem:[#allocation5 + $0x30] sm:$0xff]  ;;  %v369_v61 = vld [vmem:[%s1456_s27 + $0xb8] sm:$0xff]  ;;  %v418_v0 = vld [vmem:[#allocation5 + $0xc0] sm:$0xff] }
  0x4e   : > { %950 = vmatpush.msra.mxu2 %v431_v20  ;;  %452 = vmatpush.msra.mxu0 %v431_v20  ;;  %v352_v59 = vld [vmem:[%s1456_s27 + $0x30] sm:$0xff]  ;;  %v401_v62 = vld [vmem:[#allocation5 + $0x38] sm:$0xff]  ;;  %v370_v1 = vld [vmem:[%s1456_s27 + $0xc0] sm:$0xff] }
  0x4f   : > { %966 = vmatpush.msra.mxu3 %v383_v21  ;;  %565 = vmatpush.msra.mxu1 %v383_v21  ;;  %v353_v63 = vld [vmem:[%s1456_s27 + $0x38] sm:$0xff]  ;;  %v402_v2 = vld [vmem:[#allocation5 + $0x40] sm:$0xff]  ;;  %v419_v4 = vld [vmem:[#allocation5 + $0xc8] sm:$0xff] }
  0x50   : > { %951 = vmatpush.msra.mxu2 %v430_v22  ;;  %453 = vmatpush.msra.mxu0 %v430_v22  ;;  %v354_v3 = vld [vmem:[%s1456_s27 + $0x40] sm:$0xff]  ;;  %v371_v5 = vld [vmem:[%s1456_s27 + $0xc8] sm:$0xff]  ;;  %v420_v8 = vld [vmem:[#allocation5 + $0xd0] sm:$0xff] }
  0x51   : > { %967 = vmatpush.msra.mxu3 %v382_v23  ;;  %566 = vmatpush.msra.mxu1 %v382_v23  ;;  %v403_v6 = vld [vmem:[#allocation5 + $0x48] sm:$0xff]  ;;  %v372_v9 = vld [vmem:[%s1456_s27 + $0xd0] sm:$0xff]  ;;  %v421_v12 = vld [vmem:[#allocation5 + $0xd8] sm:$0xff] }
  0x52   : > { %952 = vmatpush.msra.mxu2 %v429_v24  ;;  %454 = vmatpush.msra.mxu0 %v429_v24  ;;  %v355_v7 = vld [vmem:[%s1456_s27 + $0x48] sm:$0xff]  ;;  %v404_v10 = vld [vmem:[#allocation5 + $0x50] sm:$0xff]  ;;  %v373_v13 = vld [vmem:[%s1456_s27 + $0xd8] sm:$0xff] }
  0x53   : > { %968 = vmatpush.msra.mxu3 %v381_v25  ;;  %567 = vmatpush.msra.mxu1 %v381_v25  ;;  %v356_v11 = vld [vmem:[%s1456_s27 + $0x50] sm:$0xff]  ;;  %v405_v14 = vld [vmem:[#allocation5 + $0x58] sm:$0xff]  ;;  %v422_v16 = vld [vmem:[#allocation5 + $0xe0] sm:$0xff] }
  0x54   : > { %953 = vmatpush.msra.mxu2 %v428_v26  ;;  %455 = vmatpush.msra.mxu0 %v428_v26  ;;  %v357_v15 = vld [vmem:[%s1456_s27 + $0x58] sm:$0xff]  ;;  %v374_v17 = vld [vmem:[%s1456_s27 + $0xe0] sm:$0xff]  ;;  %v423_v20 = vld [vmem:[#allocation5 + $0xe8] sm:$0xff] }
  0x55   : > { %969 = vmatpush.msra.mxu3 %v380_v27  ;;  %568 = vmatpush.msra.mxu1 %v380_v27  ;;  %v406_v18 = vld [vmem:[#allocation5 + $0x60] sm:$0xff]  ;;  %v375_v21 = vld [vmem:[%s1456_s27 + $0xe8] sm:$0xff]  ;;  %v424_v24 = vld [vmem:[#allocation5 + $0xf0] sm:$0xff] }
  0x56   : > { %954 = vmatpush.msra.mxu2 %v427_v28  ;;  %456 = vmatpush.msra.mxu0 %v427_v28  ;;  %v358_v19 = vld [vmem:[%s1456_s27 + $0x60] sm:$0xff]  ;;  %v407_v22 = vld [vmem:[#allocation5 + $0x68] sm:$0xff]  ;;  %v376_v25 = vld [vmem:[%s1456_s27 + $0xf0] sm:$0xff] }
  0x57   : > { %970 = vmatpush.msra.mxu3 %v379_v29  ;;  %569 = vmatpush.msra.mxu1 %v379_v29  ;;  %v359_v23 = vld [vmem:[%s1456_s27 + $0x68] sm:$0xff]  ;;  %v408_v26 = vld [vmem:[#allocation5 + $0x70] sm:$0xff]  ;;  %v425_v28 = vld [vmem:[#allocation5 + $0xf8] sm:$0xff] }
  0x58   : > { %955 = vmatpush.msra.mxu2 %v426_v30  ;;  %457 = vmatpush.msra.mxu0 %v426_v30  ;;  %v360_v27 = vld [vmem:[%s1456_s27 + $0x70] sm:$0xff]  ;;  %v377_v29 = vld [vmem:[%s1456_s27 + $0xf8] sm:$0xff] }
  0x59   : > { %971 = vmatpush.msra.mxu3 %v378_v31  ;;  %506 = vmatmul.f32.vlgmr.msra.gmra.mxu2 %v410_v32  ;;  %v409_v30 = vld [vmem:[#allocation5 + $0x78] sm:$0xff]  ;;  %v1528_v32 = vld [vmem:[%s1641_s4] ss:$0 sm:$0xff] }
  0x5a   : > { %619 = vmatmul.f32.vlgmr.msra.gmra.mxu3 %v362_v33  ;;  %570 = vmatpush.msra.mxu1 %v378_v31  ;;  %v361_v31 = vld [vmem:[%s1456_s27 + $0x78] sm:$0xff] }
  0x5b   : > { %458 = vmatmul.f32.vlgmr.msra.gmra.mxu0 %v394_v34  ;;  %571 = vmatmul.f32.vlgmr.msra.gmra.mxu1 %v346_v35 }
  0x61   : > { %509 = vmatmul.f32.gmra.mxu2 %v411_v36 }
  0x62   : > { %622 = vmatmul.f32.gmra.mxu3 %v363_v37 }
  0x63   : > { %461 = vmatmul.f32.gmra.mxu0 %v395_v38  ;;  %574 = vmatmul.f32.gmra.mxu1 %v347_v39 }
  0x69   : > { %512 = vmatmul.f32.gmra.mxu2 %v412_v40 }
  0x6a   : > { %625 = vmatmul.f32.gmra.mxu3 %v364_v41 }
  0x6b   : > { %464 = vmatmul.f32.gmra.mxu0 %v396_v42  ;;  %577 = vmatmul.f32.gmra.mxu1 %v348_v43 }
  0x71   : > { %515 = vmatmul.f32.gmra.mxu2 %v413_v44 }
  0x72   : > { %628 = vmatmul.f32.gmra.mxu3 %v365_v45 }
  0x73   : > { %467 = vmatmul.f32.gmra.mxu0 %v397_v46  ;;  %580 = vmatmul.f32.gmra.mxu1 %v349_v47 }
  0x79   : > { %518 = vmatmul.f32.gmra.mxu2 %v414_v48 }
  0x7a   : > { %631 = vmatmul.f32.gmra.mxu3 %v366_v49 }
  0x7b   : > { %470 = vmatmul.f32.gmra.mxu0 %v398_v50  ;;  %583 = vmatmul.f32.gmra.mxu1 %v350_v51 }
  0x81   : > { %521 = vmatmul.f32.gmra.mxu2 %v415_v52 }
  0x82   : > { %634 = vmatmul.f32.gmra.mxu3 %v367_v53 }
  0x83   : > { %473 = vmatmul.f32.gmra.mxu0 %v399_v54  ;;  %586 = vmatmul.f32.gmra.mxu1 %v351_v55 }
  0x89   : > { %524 = vmatmul.f32.gmra.mxu2 %v416_v56 }
  0x8a   : > { %637 = vmatmul.f32.gmra.mxu3 %v368_v57 }
  0x8b   : > { %476 = vmatmul.f32.gmra.mxu0 %v400_v58  ;;  %589 = vmatmul.f32.gmra.mxu1 %v352_v59 }
  0x91   : > { %527 = vmatmul.f32.gmra.mxu2 %v417_v60 }
  0x92   : > { %640 = vmatmul.f32.gmra.mxu3 %v369_v61 }
  0x93   : > { %479 = vmatmul.f32.gmra.mxu0 %v401_v62  ;;  %592 = vmatmul.f32.gmra.mxu1 %v353_v63 }
  0x99   : > { %530 = vmatmul.f32.gmra.mxu2 %v418_v0 }
  0x9a   : > { %643 = vmatmul.f32.gmra.mxu3 %v370_v1 }
  0x9b   : > { %482 = vmatmul.f32.gmra.mxu0 %v402_v2  ;;  %595 = vmatmul.f32.gmra.mxu1 %v354_v3 }
  0xa1   : > { %533 = vmatmul.f32.gmra.mxu2 %v419_v4 }
  0xa2   : > { %646 = vmatmul.f32.gmra.mxu3 %v371_v5 }
  0xa3   : > { %485 = vmatmul.f32.gmra.mxu0 %v403_v6  ;;  %598 = vmatmul.f32.gmra.mxu1 %v355_v7 }
  0xa9   : > { %536 = vmatmul.f32.gmra.mxu2 %v420_v8 }
  0xaa   : > { %649 = vmatmul.f32.gmra.mxu3 %v372_v9 }
  0xab   : > { %488 = vmatmul.f32.gmra.mxu0 %v404_v10  ;;  %601 = vmatmul.f32.gmra.mxu1 %v356_v11 }
  0xb1   : > { %539 = vmatmul.f32.gmra.mxu2 %v421_v12 }
  0xb2   : > { %652 = vmatmul.f32.gmra.mxu3 %v373_v13 }
  0xb3   : > { %491 = vmatmul.f32.gmra.mxu0 %v405_v14  ;;  %604 = vmatmul.f32.gmra.mxu1 %v357_v15 }
  0xb9   : > { %542 = vmatmul.f32.gmra.mxu2 %v422_v16 }
  0xba   : > { %655 = vmatmul.f32.gmra.mxu3 %v374_v17 }
  0xbb   : > { %494 = vmatmul.f32.gmra.mxu0 %v406_v18  ;;  %607 = vmatmul.f32.gmra.mxu1 %v358_v19 }
  0xc1   : > { %545 = vmatmul.f32.gmra.mxu2 %v423_v20 }
  0xc2   : > { %658 = vmatmul.f32.gmra.mxu3 %v375_v21 }
  0xc3   : > { %497 = vmatmul.f32.gmra.mxu0 %v407_v22  ;;  %610 = vmatmul.f32.gmra.mxu1 %v359_v23 }
  0xc9   : > { %548 = vmatmul.f32.gmra.mxu2 %v424_v24 }
  0xca   : > { %661 = vmatmul.f32.gmra.mxu3 %v376_v25 }
  0xcb   : > { %500 = vmatmul.f32.gmra.mxu0 %v408_v26  ;;  %613 = vmatmul.f32.gmra.mxu1 %v360_v27 }
  0xd1   : > { %551 = vmatmul.f32.gmra.mxu2 %v425_v28 }
  0xd2   : > { %664 = vmatmul.f32.gmra.mxu3 %v377_v29 }
  0xd3   : > { %503 = vmatmul.f32.gmra.mxu0 %v409_v30  ;;  %616 = vmatmul.f32.gmra.mxu1 %v361_v31 }
  0xd8   : > { %v459_v33 = vpop.f32.mrf.mxu0  ;;  %v572_v34 = vpop.f32.mrf.mxu1 }
  0xd9   : > { %v573_v35 = vadd.f32 %v572_v34, %v459_v33 }
  0xdb   : > { %v672_v36 = vadd.f32 %v1528_v32, %v573_v35 }
  0xdc   : > { %v507_v37 = vpop.f32.mrf.mxu2 }
  0xdd   : > { %v620_v38 = vpop.f32.mrf.mxu3  ;;  %v704_v39 = vmax.f32 %v672_v36, 0.0 }
  0xde   : > { %v621_v40 = vadd.f32 %v620_v38, %v507_v37 }
  0xdf   : > { %736 = vst [vmem:[%s1533_s11] sm:$0xff] %v704_v39 }
  0xe0   : > { %v688_v41 = vadd.f32 %v1528_v32, %v621_v40  ;;  %v462_v42 = vpop.f32.mrf.mxu0  ;;  %v575_v43 = vpop.f32.mrf.mxu1 }
  0xe1   : > { %v576_v45 = vadd.f32 %v575_v43, %v462_v42 }
  0xe2   : > { %v720_v44 = vmax.f32 %v688_v41, 0.0 }
  0xe3   : > { %v673_v46 = vadd.f32 %v1528_v32, %v576_v45 }
  0xe4   : > { %752 = vst [vmem:[%s1533_s11 + $0x80] sm:$0xff] %v720_v44  ;;  %v510_v47 = vpop.f32.mrf.mxu2 }
  0xe5   : > { %v623_v48 = vpop.f32.mrf.mxu3  ;;  %v705_v49 = vmax.f32 %v673_v46, 0.0 }
  0xe6   : > { %v624_v50 = vadd.f32 %v623_v48, %v510_v47 }
  0xe7   : > { %737 = vst [vmem:[%s1533_s11 + $0x8] sm:$0xff] %v705_v49 }
  0xe8   : > { %v689_v51 = vadd.f32 %v1528_v32, %v624_v50  ;;  %v465_v52 = vpop.f32.mrf.mxu0  ;;  %v578_v53 = vpop.f32.mrf.mxu1 }
  0xe9   : > { %v579_v55 = vadd.f32 %v578_v53, %v465_v52 }
  0xea   : > { %v721_v54 = vmax.f32 %v689_v51, 0.0 }
  0xeb   : > { %v674_v56 = vadd.f32 %v1528_v32, %v579_v55 }
  0xec   : > { %753 = vst [vmem:[%s1533_s11 + $0x88] sm:$0xff] %v721_v54  ;;  %v513_v57 = vpop.f32.mrf.mxu2 }
  0xed   : > { %v626_v58 = vpop.f32.mrf.mxu3  ;;  %v706_v59 = vmax.f32 %v674_v56, 0.0 }
  0xee   : > { %v627_v60 = vadd.f32 %v626_v58, %v513_v57 }
  0xef   : > { %738 = vst [vmem:[%s1533_s11 + $0x10] sm:$0xff] %v706_v59 }
  0xf0   : > { %v690_v61 = vadd.f32 %v1528_v32, %v627_v60  ;;  %v468_v62 = vpop.f32.mrf.mxu0  ;;  %v581_v63 = vpop.f32.mrf.mxu1 }
  0xf1   : > { %v582_v1 = vadd.f32 %v581_v63, %v468_v62 }
  0xf2   : > { %v722_v0 = vmax.f32 %v690_v61, 0.0 }
  0xf3   : > { %v675_v2 = vadd.f32 %v1528_v32, %v582_v1 }
  0xf4   : > { %754 = vst [vmem:[%s1533_s11 + $0x90] sm:$0xff] %v722_v0  ;;  %v516_v3 = vpop.f32.mrf.mxu2 }
  0xf5   : > { %v629_v4 = vpop.f32.mrf.mxu3  ;;  %v707_v5 = vmax.f32 %v675_v2, 0.0 }
  0xf6   : > { %v630_v6 = vadd.f32 %v629_v4, %v516_v3 }
  0xf7   : > { %739 = vst [vmem:[%s1533_s11 + $0x18] sm:$0xff] %v707_v5 }
  0xf8   : > { %v691_v7 = vadd.f32 %v1528_v32, %v630_v6  ;;  %v471_v8 = vpop.f32.mrf.mxu0  ;;  %v584_v9 = vpop.f32.mrf.mxu1 }
  0xf9   : > { %v585_v11 = vadd.f32 %v584_v9, %v471_v8 }
  0xfa   : > { %v723_v10 = vmax.f32 %v691_v7, 0.0 }
  0xfb   : > { %v676_v12 = vadd.f32 %v1528_v32, %v585_v11 }
  0xfc   : > { %755 = vst [vmem:[%s1533_s11 + $0x98] sm:$0xff] %v723_v10  ;;  %v519_v13 = vpop.f32.mrf.mxu2 }
  0xfd   : > { %v632_v14 = vpop.f32.mrf.mxu3  ;;  %v708_v15 = vmax.f32 %v676_v12, 0.0 }
  0xfe   : > { %v633_v16 = vadd.f32 %v632_v14, %v519_v13 }
  0xff   : > { %740 = vst [vmem:[%s1533_s11 + $0x20] sm:$0xff] %v708_v15 }
 0x100   : > { %v692_v17 = vadd.f32 %v1528_v32, %v633_v16  ;;  %v474_v18 = vpop.f32.mrf.mxu0  ;;  %v587_v19 = vpop.f32.mrf.mxu1 }
 0x101   : > { %v588_v21 = vadd.f32 %v587_v19, %v474_v18 }
 0x102   : > { %v724_v20 = vmax.f32 %v692_v17, 0.0 }
 0x103   : > { %v677_v22 = vadd.f32 %v1528_v32, %v588_v21 }
 0x104   : > { %756 = vst [vmem:[%s1533_s11 + $0xa0] sm:$0xff] %v724_v20  ;;  %v522_v23 = vpop.f32.mrf.mxu2 }
 0x105   : > { %v635_v24 = vpop.f32.mrf.mxu3  ;;  %v709_v25 = vmax.f32 %v677_v22, 0.0 }
 0x106   : > { %v636_v26 = vadd.f32 %v635_v24, %v522_v23 }
 0x107   : > { %741 = vst [vmem:[%s1533_s11 + $0x28] sm:$0xff] %v709_v25 }
 0x108   : > { %v693_v27 = vadd.f32 %v1528_v32, %v636_v26  ;;  %v477_v28 = vpop.f32.mrf.mxu0  ;;  %v590_v29 = vpop.f32.mrf.mxu1 }
 0x109   : > { %v591_v31 = vadd.f32 %v590_v29, %v477_v28 }
 0x10a   : > { %v725_v30 = vmax.f32 %v693_v27, 0.0 }
 0x10b   : > { %v678_v33 = vadd.f32 %v1528_v32, %v591_v31 }
 0x10c   : > { %757 = vst [vmem:[%s1533_s11 + $0xa8] sm:$0xff] %v725_v30  ;;  %v525_v34 = vpop.f32.mrf.mxu2 }
 0x10d   : > { %v638_v35 = vpop.f32.mrf.mxu3  ;;  %v710_v36 = vmax.f32 %v678_v33, 0.0 }
 0x10e   : > { %v639_v37 = vadd.f32 %v638_v35, %v525_v34 }
 0x10f   : > { %742 = vst [vmem:[%s1533_s11 + $0x30] sm:$0xff] %v710_v36 }
 0x110   : > { %v694_v38 = vadd.f32 %v1528_v32, %v639_v37  ;;  %v480_v39 = vpop.f32.mrf.mxu0  ;;  %v593_v40 = vpop.f32.mrf.mxu1 }
 0x111   : > { %v594_v42 = vadd.f32 %v593_v40, %v480_v39 }
 0x112   : > { %v726_v41 = vmax.f32 %v694_v38, 0.0 }
 0x113   : > { %v679_v43 = vadd.f32 %v1528_v32, %v594_v42 }
 0x114   : > { %758 = vst [vmem:[%s1533_s11 + $0xb0] sm:$0xff] %v726_v41  ;;  %v528_v44 = vpop.f32.mrf.mxu2 }
 0x115   : > { %v641_v45 = vpop.f32.mrf.mxu3  ;;  %v711_v46 = vmax.f32 %v679_v43, 0.0 }
 0x116   : > { %v642_v47 = vadd.f32 %v641_v45, %v528_v44 }
 0x117   : > { %743 = vst [vmem:[%s1533_s11 + $0x38] sm:$0xff] %v711_v46 }
 0x118   : > { %v695_v48 = vadd.f32 %v1528_v32, %v642_v47  ;;  %v483_v49 = vpop.f32.mrf.mxu0  ;;  %v596_v50 = vpop.f32.mrf.mxu1 }
 0x119   : > { %v597_v52 = vadd.f32 %v596_v50, %v483_v49 }
 0x11a   : > { %v727_v51 = vmax.f32 %v695_v48, 0.0 }
 0x11b   : > { %v680_v53 = vadd.f32 %v1528_v32, %v597_v52 }
 0x11c   : > { %759 = vst [vmem:[%s1533_s11 + $0xb8] sm:$0xff] %v727_v51  ;;  %v531_v54 = vpop.f32.mrf.mxu2 }
 0x11d   : > { %v644_v55 = vpop.f32.mrf.mxu3  ;;  %v712_v56 = vmax.f32 %v680_v53, 0.0 }
 0x11e   : > { %v645_v57 = vadd.f32 %v644_v55, %v531_v54 }
 0x11f   : > { %744 = vst [vmem:[%s1533_s11 + $0x40] sm:$0xff] %v712_v56 }
 0x120   : > { %v696_v58 = vadd.f32 %v1528_v32, %v645_v57  ;;  %v486_v59 = vpop.f32.mrf.mxu0  ;;  %v599_v60 = vpop.f32.mrf.mxu1 }
 0x121   : > { %v600_v62 = vadd.f32 %v599_v60, %v486_v59 }
 0x122   : > { %v728_v61 = vmax.f32 %v696_v58, 0.0 }
 0x123   : > { %v681_v63 = vadd.f32 %v1528_v32, %v600_v62 }
 0x124   : > { %760 = vst [vmem:[%s1533_s11 + $0xc0] sm:$0xff] %v728_v61  ;;  %v534_v0 = vpop.f32.mrf.mxu2 }
 0x125   : > { %v647_v1 = vpop.f32.mrf.mxu3  ;;  %v713_v2 = vmax.f32 %v681_v63, 0.0 }
 0x126   : > { %v648_v3 = vadd.f32 %v647_v1, %v534_v0 }
 0x127   : > { %745 = vst [vmem:[%s1533_s11 + $0x48] sm:$0xff] %v713_v2 }
 0x128   : > { %v697_v4 = vadd.f32 %v1528_v32, %v648_v3  ;;  %v489_v5 = vpop.f32.mrf.mxu0  ;;  %v602_v6 = vpop.f32.mrf.mxu1 }
 0x129   : > { %v603_v8 = vadd.f32 %v602_v6, %v489_v5 }
 0x12a   : > { %v729_v7 = vmax.f32 %v697_v4, 0.0 }
 0x12b   : > { %v682_v9 = vadd.f32 %v1528_v32, %v603_v8 }
 0x12c   : > { %761 = vst [vmem:[%s1533_s11 + $0xc8] sm:$0xff] %v729_v7  ;;  %v537_v10 = vpop.f32.mrf.mxu2 }
 0x12d   : > { %v650_v11 = vpop.f32.mrf.mxu3  ;;  %v714_v12 = vmax.f32 %v682_v9, 0.0 }
 0x12e   : > { %v651_v13 = vadd.f32 %v650_v11, %v537_v10 }
 0x12f   : > { %746 = vst [vmem:[%s1533_s11 + $0x50] sm:$0xff] %v714_v12 }
 0x130   : > { %v698_v14 = vadd.f32 %v1528_v32, %v651_v13  ;;  %v492_v15 = vpop.f32.mrf.mxu0  ;;  %v605_v16 = vpop.f32.mrf.mxu1 }
 0x131   : > { %v606_v18 = vadd.f32 %v605_v16, %v492_v15 }
 0x132   : > { %v730_v17 = vmax.f32 %v698_v14, 0.0 }
 0x133   : > { %v683_v19 = vadd.f32 %v1528_v32, %v606_v18 }
 0x134   : > { %762 = vst [vmem:[%s1533_s11 + $0xd0] sm:$0xff] %v730_v17  ;;  %v540_v20 = vpop.f32.mrf.mxu2 }
 0x135   : > { %v653_v21 = vpop.f32.mrf.mxu3  ;;  %v715_v22 = vmax.f32 %v683_v19, 0.0 }
 0x136   : > { %v654_v23 = vadd.f32 %v653_v21, %v540_v20 }
 0x137   : > { %747 = vst [vmem:[%s1533_s11 + $0x58] sm:$0xff] %v715_v22 }
 0x138   : > { %v699_v24 = vadd.f32 %v1528_v32, %v654_v23  ;;  %v495_v25 = vpop.f32.mrf.mxu0  ;;  %v608_v26 = vpop.f32.mrf.mxu1 }
 0x139   : > { %v609_v28 = vadd.f32 %v608_v26, %v495_v25 }
 0x13a   : > { %v731_v27 = vmax.f32 %v699_v24, 0.0 }
 0x13b   : > { %v684_v29 = vadd.f32 %v1528_v32, %v609_v28 }
 0x13c   : > { %763 = vst [vmem:[%s1533_s11 + $0xd8] sm:$0xff] %v731_v27  ;;  %v543_v30 = vpop.f32.mrf.mxu2 }
 0x13d   : > { %v656_v31 = vpop.f32.mrf.mxu3  ;;  %v716_v33 = vmax.f32 %v684_v29, 0.0 }
 0x13e   : > { %v657_v34 = vadd.f32 %v656_v31, %v543_v30 }
 0x13f   : > { %748 = vst [vmem:[%s1533_s11 + $0x60] sm:$0xff] %v716_v33 }
 0x140   : > { %v700_v35 = vadd.f32 %v1528_v32, %v657_v34  ;;  %v498_v36 = vpop.f32.mrf.mxu0  ;;  %v611_v37 = vpop.f32.mrf.mxu1 }
 0x141   : > { %v612_v39 = vadd.f32 %v611_v37, %v498_v36 }
 0x142   : > { %v732_v38 = vmax.f32 %v700_v35, 0.0 }
 0x143   : > { %v685_v40 = vadd.f32 %v1528_v32, %v612_v39 }
 0x144   : > { %764 = vst [vmem:[%s1533_s11 + $0xe0] sm:$0xff] %v732_v38  ;;  %v546_v41 = vpop.f32.mrf.mxu2 }
 0x145   : > { %v659_v42 = vpop.f32.mrf.mxu3  ;;  %v717_v43 = vmax.f32 %v685_v40, 0.0 }
 0x146   : > { %v660_v44 = vadd.f32 %v659_v42, %v546_v41 }
 0x147   : > { %749 = vst [vmem:[%s1533_s11 + $0x68] sm:$0xff] %v717_v43 }
 0x148   : > { %v701_v45 = vadd.f32 %v1528_v32, %v660_v44  ;;  %v501_v46 = vpop.f32.mrf.mxu0  ;;  %v614_v47 = vpop.f32.mrf.mxu1 }
 0x149   : > { %v615_v49 = vadd.f32 %v614_v47, %v501_v46 }
 0x14a   : > { %v733_v48 = vmax.f32 %v701_v45, 0.0 }
 0x14b   : > { %v686_v50 = vadd.f32 %v1528_v32, %v615_v49 }
 0x14c   : > { %765 = vst [vmem:[%s1533_s11 + $0xe8] sm:$0xff] %v733_v48  ;;  %v549_v51 = vpop.f32.mrf.mxu2 }
 0x14d   : > { %v662_v52 = vpop.f32.mrf.mxu3  ;;  %v718_v53 = vmax.f32 %v686_v50, 0.0 }
 0x14e   : > { %v663_v54 = vadd.f32 %v662_v52, %v549_v51 }
 0x14f   : > { %750 = vst [vmem:[%s1533_s11 + $0x70] sm:$0xff] %v718_v53 }
 0x150   : > { %v702_v55 = vadd.f32 %v1528_v32, %v663_v54  ;;  %v504_v56 = vpop.f32.mrf.mxu0  ;;  %v617_v57 = vpop.f32.mrf.mxu1 }
 0x151   : > { %v618_v59 = vadd.f32 %v617_v57, %v504_v56 }
 0x152   : > { %v734_v58 = vmax.f32 %v702_v55, 0.0 }
 0x153   : > { %v687_v60 = vadd.f32 %v1528_v32, %v618_v59 }
 0x154   : > { %766 = vst [vmem:[%s1533_s11 + $0xf0] sm:$0xff] %v734_v58  ;;  %v552_v61 = vpop.f32.mrf.mxu2 }
 0x155   : > { %v665_v62 = vpop.f32.mrf.mxu3  ;;  %v719_v63 = vmax.f32 %v687_v60, 0.0 }
 0x156   : > { %v666_v0 = vadd.f32 %v665_v62, %v552_v61 }
 0x157   : > { %751 = vst [vmem:[%s1533_s11 + $0x78] sm:$0xff] %v719_v63 }
 0x158   : > { %v703_v1 = vadd.f32 %v1528_v32, %v666_v0 }
 0x15a   : > { %v735_v2 = vmax.f32 %v703_v1, 0.0 }
 0x15c   : > { %767 = vst [vmem:[%s1533_s11 + $0xf8] sm:$0xff] %v735_v2 }
 0x15d   : > { %1212 = shalt.err (!%p1209_p0)
}
 0x15e   : > { %s1285_s20 = smov 128   ;;  %s1286_s23 = smov 8  }
 0x15f   : > { %984 = dma.vmem_to_hbm [thread:$0]  (%p1401_p5), %s784_s30, 4096, %s786_s21, %s769_s7, %s1285_s20, %s1285_s20, %s1286_s23  }
 0x160 PF: > { %s1672_s0 = sld [smem:[#allocation15_spill]]  ;;  %p1001_p3 = pnand %p919_p11, %p1362_p6 }
 0x161   : > { %s1674_s27 = sld [smem:[#allocation17_spill]] }
 0x162   : > { %p1002_p7 = pneg %p1001_p3 }
 0x166   : > { %s800_s6 = sand.u32 1, %s1672_s0  }
 0x167   : > { %s801_s9 = scalar_lea.sflag [#allocation4], %s800_s6 }
 0x168   : > { %1254 = dma.done.wait (%p1002_p7), %s801_s9, 4096  }
 0x169   : > { %1256 = vsyncadd (%p1002_p7), %s801_s9, 4294963200  ;;  %s22_s23 = sadd.s32 1, %s1674_s27   ;;  %s1675_s24 = sld [smem:[#allocation16_spill]] }
 0x16a   : > { %p19_p9 = scmp.ge.s32.totalorder %s22_s23, 4   ;;  %s1676_s20 = sld [smem:[#allocation20_spill]] }
 0x16b   : > { %s1677_s15 = sld [smem:[#allocation19_spill]]  ;;  %s1678_s18 = smov %s1263_s19 }
 0x16c   : > { %s1680_s21 = smov %s1275_s22 }
 0x16d   :  { %21 = sbr.rel (!%p19_p9) target bundleno = 10 (0xa), region = 105 }
 0x16f   : > { %s1679_s19 = smov %s1675_s24 }
 0x171   : > { %s1681_s22 = smov %s1677_s15 }
 0x172   :  { %807 = vsyncpa [#allocation3], 1 }
 0x173   :  { %809 = vsyncpa [#allocation3 + $0x1], 1 }
 0x174   :  { %810 = vsyncpa [#allocation6], 1 }
 0x175   :  { %811 = vsyncpa [#allocation4], 1 }
 0x176   :  { %813 = vsyncpa [#allocation4 + $0x1], 1 }

</bundles_post_ra>
